<compile_context>
chip_gen: v6e
topology: v6e:2x2x1
jax: 0.10.0
libtpu: 0.0.40
codegen_flags: <defaults>
</compile_context>

<pallas_src>
import functools

import jax
import jax.numpy as jnp
from jax import lax
from jax.experimental import pallas as pl
from jax.experimental.pallas import tpu as pltpu

COLBERT_DIM = 64
EPS = 1e-12          # torch.nn.functional.normalize default eps
# Feed the MXU bf16 inputs (v6e/v7x recommendation) while keeping all accumulation,
# the L2 normalization and the max/sum reductions in float32.  Flip to False for
# bit-closer f32 parity with the PyTorch reference.
MATMUL_IN_BF16 = True
_COMPUTE_DTYPE = jnp.bfloat16 if MATMUL_IN_BF16 else jnp.float32


def _round_up(x, m):
    return ((x + m - 1) // m) * m


def _vmem_limit_bytes(bytes_per_step):
    # Double-buffered pipeline + headroom; 40 MiB ceiling keeps compiler-scratch
    # headroom on v7x (64 MiB physical VMEM) while letting big tiles through on
    # v5e/v6e (128 MiB physical VMEM).
    return int(min(max(2 * bytes_per_step + (2 << 20), 8 << 20), 40 << 20))


def _pick_row_tile(m, block_m):
    """Pick a row tile: largest multiple-of-8 tile <= block_m dividing round_up(m,8)
    (avoids a full jnp.pad copy of the activations); fall back to padding."""
    m8 = _round_up(m, 8)
    t = min(block_m, m8)
    t -= t % 8
    t = max(t, 8)
    cand = t
    while cand >= 128:
        if m8 % cand == 0:
            return cand, m8
        cand -= 8
    return t, _round_up(m8, t)


# ----------------------------------------------------------------------------
# Kernel 1: linear projection (no bias) + L2 normalization along the last axis
# ----------------------------------------------------------------------------
def _project_normalize_kernel(x_ref, w_ref, o_ref):
    # x_ref: (TM, H), w_ref: (H, 64), o_ref: (TM, 64)
    w = w_ref[...]
    x = x_ref[...].astype(w.dtype)   # no-op when the backbone already emits bf16
    y = jnp.dot(x, w, preferred_element_type=jnp.float32)          # f32 accumulate
    ss = jnp.sum(y * y, axis=1, keepdims=True)                     # (TM, 1) f32
    # F.normalize(p=2): y / max(||y||, eps) == y * rsqrt(max(||y||^2, eps^2))
    y = y * lax.rsqrt(jnp.maximum(ss, EPS * EPS))
    o_ref[...] = y.astype(o_ref.dtype)


def project_normalize(x, w, *, block_m=512):
    """L2-normalize(x @ w, dim=-1).  x: (M, H), w: (H, 64) -> (M, 64)."""
    M, H = x.shape
    out_dtype = _COMPUTE_DTYPE
    tm, m_pad = _pick_row_tile(M, block_m)
    if m_pad != M:
        x = jnp.pad(x, ((0, m_pad - M), (0, 0)))
    bytes_per_step = (tm * H * jnp.dtype(x.dtype).itemsize
                      + H * COLBERT_DIM * jnp.dtype(w.dtype).itemsize
                      + tm * COLBERT_DIM * jnp.dtype(out_dtype).itemsize)
    out = pl.pallas_call(
        _project_normalize_kernel,
        out_shape=jax.ShapeDtypeStruct((m_pad, COLBERT_DIM), out_dtype),
        grid=(m_pad // tm,),
        in_specs=[
            pl.BlockSpec((tm, H), lambda i: (i, 0)),
            pl.BlockSpec((H, COLBERT_DIM), lambda i: (0, 0)),
        ],
        out_specs=pl.BlockSpec((tm, COLBERT_DIM), lambda i: (i, 0)),
        compiler_params=pltpu.CompilerParams(
            dimension_semantics=("parallel",),
            vmem_limit_bytes=_vmem_limit_bytes(bytes_per_step)),
    )(x, w)
    return out[:M] if m_pad != M else out


# ----------------------------------------------------------------------------
# Kernel 2: eval-path MaxSim  (qry_token @ doc_token^T).max(2).values.sum(1)
# ----------------------------------------------------------------------------
def _maxsim_eval_kernel(q_ref, d_ref, o_ref):
    # q_ref: (TB, Lq, 64), d_ref: (TB, Ld, 64), o_ref: (TB, 128)
    s = jnp.einsum('bqd,bkd->bqk', q_ref[...], d_ref[...],
                   preferred_element_type=jnp.float32)             # (TB, Lq, Ld)
    tot = jnp.sum(jnp.max(s, axis=2), axis=1)                      # (TB,)
    o_ref[...] = jnp.broadcast_to(tot[:, None], o_ref.shape).astype(o_ref.dtype)


def maxsim_eval(q, d, *, block_b=8):
    """q: (B, Lq, 64), d: (B, Ld, 64) -> (B,) f32 ColBERT MaxSim retrieval score."""
    B, Lq, D = q.shape
    Bd, Ld, Dd = d.shape
    assert B == Bd and D == COLBERT_DIM and Dd == COLBERT_DIM
    if B <= block_b:
        tb, b_pad = B, B
    else:
        tb = block_b
        b_pad = _round_up(B, tb)
        if b_pad != B:
            q = jnp.pad(q, ((0, b_pad - B), (0, 0), (0, 0)))
            d = jnp.pad(d, ((0, b_pad - B), (0, 0), (0, 0)))
    itemsize = jnp.dtype(q.dtype).itemsize
    bytes_per_step = tb * (Lq + Ld) * D * itemsize + tb * 128 * 4
    out = pl.pallas_call(
        _maxsim_eval_kernel,
        out_shape=jax.ShapeDtypeStruct((b_pad, 128), jnp.float32),
        grid=(b_pad // tb,),
        in_specs=[
            pl.BlockSpec((tb, Lq, D), lambda b: (b, 0, 0)),
            pl.BlockSpec((tb, Ld, D), lambda b: (b, 0, 0)),
        ],
        out_specs=pl.BlockSpec((tb, 128), lambda b: (b, 0)),
        compiler_params=pltpu.CompilerParams(
            dimension_semantics=("parallel",),
            vmem_limit_bytes=_vmem_limit_bytes(bytes_per_step)),
    )(q, d)
    return out[:B, 0]


# ----------------------------------------------------------------------------
# Kernel 3: training-path pairwise MaxSim score matrix
#   scores[i, j] = sum_q max_d ( q_token[i] . d_token[j] )
# ----------------------------------------------------------------------------
def _maxsim_pairwise_kernel(q_ref, d_ref, o_ref, mmax_ref, *, lq, lc):
    # q_ref:    (tq*lq, 64)   flattened query tokens of this q-tile (query-major rows)
    # d_ref:    (Ld, 64, td)  doc tokens of this d-tile, K-major (no RHS transpose)
    # o_ref:    (tq, td)      MaxSim scores for (q-tile, d-tile)
    # mmax_ref: (tq*lq, td)   f32 VMEM scratch: running max over doc tokens,
    #                         read-modify-written once per chunk of lc tokens.
    n_tok = d_ref.shape[0]
    n_chunks = n_tok // lc
    tq, td = o_ref.shape
    q = q_ref[...]

    def chunk_max(c):
        # lc MXU-sized matmuls (m_rows, 64) x (64, td) combined in-value before the
        # single running-max update -> the mmax RMW traffic is amortized by lc.
        m = jnp.dot(q, d_ref[c * lc], preferred_element_type=jnp.float32)
        for l in range(1, lc):
            m = jnp.maximum(m, jnp.dot(q, d_ref[c * lc + l],
                                       preferred_element_type=jnp.float32))
        return m

    # Initialize from the first chunk's result instead of a full -inf fill.
    mmax_ref[...] = chunk_max(0)

    if n_chunks > 1:
        if n_chunks <= 8:
            # Small static unroll: LLO can interleave MXU pushes / VPU maxes / stores.
            for c in range(1, n_chunks):
                mmax_ref[...] = jnp.maximum(mmax_ref[...], chunk_max(c))
        else:
            def body(c, carry):
                mmax_ref[...] = jnp.maximum(mmax_ref[...], chunk_max(c))
                return carry
            lax.fori_loop(1, n_chunks, body, 0)

    # Sum the per-(query-token, doc) maxima over each query's lq tokens.
    m = mmax_ref[...].reshape(tq, lq, td)
    o_ref[...] = jnp.sum(m, axis=1).astype(o_ref.dtype)


def maxsim_pairwise(q, d, *, target_rows=512):
    """q: (Nq, Lq, 64), d: (Nd, Ld, 64) -> (Nq, Nd) f32 pairwise MaxSim matrix."""
    Nq, Lq, D = q.shape
    Nd, Ld, Dd = d.shape
    assert D == COLBERT_DIM and Dd == COLBERT_DIM

    # q-tile: ~target_rows MXU rows (tq * Lq) per step; tq multiple of 8.
    tq = _round_up(max(1, target_rows // max(Lq, 1)), 8)
    tq = min(tq, _round_up(Nq, 8))
    nq_pad = _round_up(Nq, tq)
    # d-tile: 128-wide lane-dense output tiles for large Nd; one full tile otherwise.
    td = _round_up(Nd, 8) if Nd <= 128 else 128
    nd_pad = _round_up(Nd, td)
    # doc-token chunk size for the in-kernel loop.
    lc = next(c for c in (8, 4, 2, 1) if Ld % c == 0)

    if nq_pad != Nq:
        q = jnp.pad(q, ((0, nq_pad - Nq), (0, 0), (0, 0)))
    if nd_pad != Nd:
        d = jnp.pad(d, ((0, nd_pad - Nd), (0, 0), (0, 0)))

    q2 = q.reshape(nq_pad * Lq, D)            # (rows, 64): free leading-dim merge
    d2 = jnp.transpose(d, (1, 2, 0))          # (Ld, 64, Nd): K-major MXU RHS layout

    m_rows = tq * Lq
    itemsize = jnp.dtype(q.dtype).itemsize
    bytes_per_step = (m_rows * D * itemsize          # q tile
                      + Ld * D * td * itemsize       # d tile
                      + m_rows * td * 4              # running-max scratch
                      + tq * td * 4)                 # output tile

    out = pl.pallas_call(
        functools.partial(_maxsim_pairwise_kernel, lq=Lq, lc=lc),
        out_shape=jax.ShapeDtypeStruct((nq_pad, nd_pad), jnp.float32),
        # d-tiles on the leading grid axis: the (much larger) doc tensor streams from
        # HBM exactly once; the small q tile is re-fetched per step.
        grid=(nd_pad // td, nq_pad // tq),
        in_specs=[
            pl.BlockSpec((m_rows, D), lambda j, i: (i, 0)),
            pl.BlockSpec((Ld, D, td), lambda j, i: (0, 0, j)),
        ],
        out_specs=pl.BlockSpec((tq, td), lambda j, i: (i, j)),
        scratch_shapes=[pltpu.VMEM((m_rows, td), jnp.float32)],
        compiler_params=pltpu.CompilerParams(
            dimension_semantics=("parallel", "parallel"),
            vmem_limit_bytes=_vmem_limit_bytes(bytes_per_step)),
    )(q2, d2)
    return out[:Nq, :Nd]


# ----------------------------------------------------------------------------
# Glue: cross-entropy (reduction='mean'), matching nn.CrossEntropyLoss
# ----------------------------------------------------------------------------
def cross_entropy_mean(scores, labels):
    lse = jax.nn.logsumexp(scores, axis=1)                            # (N,)
    picked = jnp.take_along_axis(scores, labels[:, None], axis=1)[:, 0]
    return jnp.mean(lse - picked)


# ----------------------------------------------------------------------------
# ColBertWorld equivalent (forward only)
# ----------------------------------------------------------------------------
class ColBertWorldPallas:
    def __init__(self, hidden_size, train_group_size=1, key=None):
        key = jax.random.PRNGKey(0) if key is None else key
        # nn.Linear(hidden_size, 64, bias=False).weight has shape (64, hidden);
        # we store its transpose (hidden, 64) so the kernel computes x @ W^T directly.
        w = jax.random.normal(key, (hidden_size, COLBERT_DIM), jnp.float32) \
            * (1.0 / jnp.sqrt(hidden_size))
        # Pre-cast once at init (per-call wrapper casts would add an HBM pass).
        self.w = w.astype(_COMPUTE_DTYPE)
        self.train_group_size = train_group_size

    def _encode(self, qry_hidden, doc_hidden):
        # Two projection calls (no concatenate): the projection kernel is HBM-bound,
        # and a wrapper concat is a full extra read+write pass over the hidden states.
        Bq, Lq, H = qry_hidden.shape
        Bd, Ld, _ = doc_hidden.shape
        q = project_normalize(qry_hidden.reshape(Bq * Lq, H), self.w)
        d = project_normalize(doc_hidden.reshape(Bd * Ld, H), self.w)
        return q.reshape(Bq, Lq, COLBERT_DIM), d.reshape(Bd, Ld, COLBERT_DIM)

    def __call__(self, qry_hidden, doc_hidden, training=False):
        q, d = self._encode(qry_hidden, doc_hidden)
        if not training:
            # score_ir = (q @ d^T).max(2).values.sum(1)
            return maxsim_eval(q, d)
        # world_size == 1: gather_tensors is the identity.
        scores = maxsim_pairwise(q, d)                                 # (Nq, Nd)
        labels = jnp.arange(scores.shape[0], dtype=jnp.int32) * self.train_group_size
        loss = cross_entropy_mean(scores, labels)
        return loss, loss


if __name__ == "__main__":
    # Small shapes consistent with the module: batch=2, seq=8, hidden=32.
    B, Lq, Ld, H = 2, 8, 8, 32
    key = jax.random.PRNGKey(0)
    k1, k2, k3 = jax.random.split(key, 3)
    # TODO(synk): the HF transformer backbone has no clean Pallas equivalent; these
    # stand-ins model model(...).last_hidden_state emitted directly in the matmul
    # compute dtype (bf16), so no separate wrapper-cast HBM pass is needed.
    qry_hidden = jax.random.normal(k1, (B, Lq, H), jnp.float32).astype(_COMPUTE_DTYPE)
    doc_hidden = jax.random.normal(k2, (B, Ld, H), jnp.float32).astype(_COMPUTE_DTYPE)

    model = ColBertWorldPallas(hidden_size=H, train_group_size=1, key=k3)

    # Eval branch (not self.training): per-query MaxSim retrieval score, shape (B,)
    score_ir = model(qry_hidden, doc_hidden, training=False)
    jax.block_until_ready(score_ir)

    # Training branch: in-batch contrastive loss over the pairwise MaxSim score matrix
    loss, _ = model(qry_hidden, doc_hidden, training=True)
    jax.block_until_ready(loss)

    print("KERNEL_OK")
</pallas_src>

<mosaic_0001>
module attributes {stable_mosaic.version = 11 : i64} {
  func.func @_project_normalize_kernel(%arg0: i32, %arg1: memref<16x32xbf16, #tpu.memory_space<vmem>>, %arg2: memref<32x64xbf16, #tpu.memory_space<vmem>>, %arg3: memref<16x64xbf16, #tpu.memory_space<vmem>>) attributes {dimension_semantics = [#tpu.dimension_semantics<parallel>], iteration_bounds = array<i64: 1>, scalar_prefetch = 0 : i64, scratch_operands = 0 : i64, tpu.core_type = #tpu.core_type<tc>, window_params = [{transform_indices = @transform_0, window_bounds = array<i64: 16, 32>}, {pipeline_mode = #tpu.pipeline_mode<synchronous>, transform_indices = @transform_1, window_bounds = array<i64: 32, 64>}, {transform_indices = @transform_2, window_bounds = array<i64: 16, 64>}]} {
    %c0 = arith.constant 0 : index
    %c0_0 = arith.constant 0 : index
    %0 = vector.load %arg2[%c0, %c0_0] : memref<32x64xbf16, #tpu.memory_space<vmem>>, vector<32x64xbf16>
    %c0_1 = arith.constant 0 : index
    %c0_2 = arith.constant 0 : index
    %1 = vector.load %arg1[%c0_1, %c0_2] : memref<16x32xbf16, #tpu.memory_space<vmem>>, vector<16x32xbf16>
    %cst = arith.constant dense<0.000000e+00> : vector<16x64xf32>
    %2 = tpu.matmul %1, %0, %cst {dimension_numbers = #tpu.dot_dimension_numbers<[1], [0], [0], [1], [0, 0, 1, 1], [], []>} : vector<16x32xbf16>, vector<32x64xbf16>, vector<16x64xf32> -> vector<16x64xf32>
    %3 = arith.mulf %2, %2 : vector<16x64xf32>
    %cst_3 = arith.constant dense<0.000000e+00> : vector<16xf32>
    %4 = vector.multi_reduction <add>, %3, %cst_3 [1] : vector<16x64xf32> to vector<16xf32>
    %5 = vector.shape_cast %4 : vector<16xf32> to vector<16x1xf32>
    %cst_4 = arith.constant 1.000000e-24 : f32
    %6 = vector.broadcast %cst_4 : f32 to vector<16x1xf32>
    %7 = arith.maximumf %5, %6 : vector<16x1xf32>
    %8 = math.rsqrt %7 : vector<16x1xf32>
    %9 = vector.broadcast %8 : vector<16x1xf32> to vector<16x64xf32>
    %10 = arith.mulf %2, %9 : vector<16x64xf32>
    %11 = arith.truncf %10 : vector<16x64xf32> to vector<16x64xbf16>
    %c0_5 = arith.constant 0 : index
    %c0_6 = arith.constant 0 : index
    %12 = vector.load %arg3[%c0_5, %c0_6] : memref<16x64xbf16, #tpu.memory_space<vmem>>, vector<16x64xbf16>
    tpu.vector_store %arg3[%c0_5, %c0_6], %11 {strides = array<i32>} : memref<16x64xbf16, #tpu.memory_space<vmem>>, vector<16x64xbf16>,
    return
  }
  func.func @transform_0(%arg0: i32) -> (i32, i32) {
    %c0_i32 = arith.constant 0 : i32
    %c0_i32_0 = arith.constant 0 : i32
    return %arg0, %c0_i32 : i32, i32
  }
  func.func @transform_1(%arg0: i32) -> (i32, i32) {
    %c0_i32 = arith.constant 0 : i32
    %c0_i32_0 = arith.constant 0 : i32
    %c0_i32_1 = arith.constant 0 : i32
    return %c0_i32, %c0_i32_0 : i32, i32
  }
  func.func @transform_2(%arg0: i32) -> (i32, i32) {
    %c0_i32 = arith.constant 0 : i32
    %c0_i32_0 = arith.constant 0 : i32
    return %arg0, %c0_i32 : i32, i32
  }
}

</mosaic_0001>

<bundles_post_ra>
// kernel: tpu_custom_call.1
= control target key start
LH: loop header
LB: loop body
LE: loop exit
PB: predicated region body
PF: predicated region fallthrough
CT: control target
= control target key end

     0   :  { %7 = vsyncpa [#allocation3], 0  ;;  %s292_s0 = inlined_call_operand.hbm [shape: bf16[16,32], index: 0, kind: input, shape index: {}]   ;;  %s293_s1 = inlined_call_operand.hbm [shape: bf16[32,64], index: 1, kind: input, shape index: {}]   ;;  %s294_s2 = inlined_call_operand.hbm [shape: bf16[16,64], index: 2, kind: output, shape index: {}]  }
   0x1   :  { %8 = vsyncpa [#allocation6], 0 }
   0x2   :  { %9 = vsyncpa [#allocation4], 0  ;;  %s252_s9 = smov [#allocation2]  }
   0x3   :  { %s15_s10 = sshll.u32 %s252_s9, 4  ;;  %s16_s10 = int_to_ptr.vmem [resolvable:$true] %s15_s10 }
   0x4   :  { %s194_s11 = scalar_lea.vmem %s16_s10, 128  ;;  %p199_p1 = scmp.lt.s32.totalorder %s16_s10, %s16_s10 }
   0x5   :  { %p195_p0 = scmp.ne.s32.totalorder %s16_s10, %s194_s11  ;;  %p200_p2 = scmp.lt.s32.totalorder %s194_s11, %s194_s11 }
   0x7   :  { %p201_p3 = por %p200_p2, %p199_p1 }
   0x9   :  { %p202_p4 = pnand %p201_p3, %p195_p0 }
   0xb   :  { %205 = shalt.err (!%p202_p4)
}
   0xc   :  { %s253_s12 = smov 64   ;;  %s254_s13 = smov 4  }
   0xd   :  { %21 = dma.hbm_to_vmem [thread:$0]  %s292_s0, 128, %s16_s10, [#allocation3], %s253_s12, %s253_s12, %s254_s13  }
   0xe   :  { %s255_s16 = smov [#allocation5]  }
   0xf   :  { %s27_s17 = sshll.u32 %s255_s16, 4  ;;  %s28_s17 = int_to_ptr.vmem [resolvable:$true] %s27_s17 }
  0x10   :  { %s214_s18 = scalar_lea.vmem %s28_s17, 256  ;;  %p219_p6 = scmp.lt.s32.totalorder %s28_s17, %s28_s17 }
  0x11   :  { %p215_p5 = scmp.ne.s32.totalorder %s28_s17, %s214_s18  ;;  %p220_p7 = scmp.lt.s32.totalorder %s214_s18, %s214_s18 }
  0x13   :  { %p221_p8 = por %p220_p7, %p219_p6 }
  0x15   :  { %p222_p9 = pnand %p221_p8, %p215_p5 }
  0x17   :  { %225 = shalt.err (!%p222_p9)
}
  0x18   :  { %33 = dma.hbm_to_vmem [thread:$0]  %s293_s1, 256, %s28_s17, [#allocation6], %s253_s12, %s253_s12, %s254_s13  }
  0x19   :  { %246 = dma.done.wait [#allocation3], 128  }
  0x1a   :  { %247 = vsyncadd [#allocation3], 4294967168 }
  0x1b   :  { %248 = dma.done.wait [#allocation6], 256  }
  0x1c   :  { %249 = vsyncadd [#allocation6], 4294967040  ;;  %v256_v0 = vmov 0.0   ;;  %vm257_vm0 = vmmov 0   ;;  %v179_v1 = vld [vmem:[#allocation5 + $0x8] sm:$0xff]   ;;  %v180_v2 = vld [vmem:[#allocation5] sm:$0xff]  }
  0x1d   :  { %164 = vmatprep.subr.bf16.mxu0 %v256_v0  ;;  %168 = vmatprep.mubr.msk.bf16.mxu0 %vm257_vm0, %v256_v0  ;;  %v181_v3 = vld [vmem:[#allocation2] sm:$0xff]   ;;  %vm64_vm1 = vcmask 261120   ;;  %vm111_vm2 = vcmask 523264   ;;  %vm132_vm3 = vcmask 519168   ;;  %s258_s0 = smov [#allocation7]  }
  0x1e   :  { %165 = vmatpush3.bf16.msra.mxu0 %v179_v1  ;;  %s140_s1 = sshll.u32 %s258_s0, 4  ;;  %s141_s1 = int_to_ptr.vmem [resolvable:$true] %s140_s1 }
  0x1f   :  { %166 = vmatprep.subr.bf16.mxu0 %v256_v0  ;;  %s226_s21 = scalar_lea.vmem %s141_s1, 128  ;;  %p231_p11 = scmp.lt.s32.totalorder %s141_s1, %s141_s1 }
  0x20   :  { %p227_p10 = scmp.ne.s32.totalorder %s141_s1, %s226_s21  ;;  %p232_p12 = scmp.lt.s32.totalorder %s226_s21, %s226_s21 }
  0x22   :  { %167 = vmatpush3.bf16.msra.mxu0 %v180_v2  ;;  %p233_p13 = por %p232_p12, %p231_p11 }
  0x24   :  { %p234_p0 = pnand %p233_p13, %p227_p10 }
  0x25   :  { %169 = vmatmul.mubr.msk.bf16.vlgmr.msra.gmra.mxu0 %vm64_vm1, %v181_v3 }
  0xe5   :  { %v102_v4 = vpop.f32.mrf.mxu0 }
  0xe6   :  { %v109_v5 = vmul.f32 %v102_v4, %v102_v4 }
  0xe7   :  { %v170_v6 = vpop.f32.mrf.mxu0 }
  0xe8   :  { %v112_v7 = vsel %vm111_vm2, %v109_v5, 0.0 }
  0xe9   :  { %113 = vadd.xlane.f32.xlu0 %v112_v7  ;;  %v105_v8 = vpop.f32.mrf.mxu0 }
  0xea   :  { %v110_v9 = vmul.f32 %v105_v8, %v105_v8 }
  0xeb   :  { %v171_v10 = vpop.f32.mrf.mxu0 }
  0xec   :  { %v115_v11 = vsel %vm111_vm2, %v110_v9, 0.0 }
  0xed   :  { %116 = vadd.xlane.f32.xlu0 %v115_v11 }
 0x172   :  { %v114_v12 = vpop.xlane.xlu0 %113 }
 0x173   :  { %v118_v13 = vmax.f32 %v114_v12, 1e-24 }
 0x175   :  { %182 = vrsqrt.f32 %v118_v13 }
 0x176   :  { %v117_v14 = vpop.xlane.xlu0 %116 }
 0x177   :  { %v119_v15 = vmax.f32 %v117_v14, 1e-24 }
 0x179   :  { %184 = vrsqrt.f32 %v119_v15 }
 0x182   :  { %v183_v16 = vpop.eup %182 }
 0x183   :  { %v122_v17 = vmul.f32 %v183_v16, %v102_v4 }
 0x185   :  { %v159_v18 = vpack.c.bf16 %v122_v17, %v122_v17 }
 0x186   :  { %v185_v19 = vpop.eup %184 }
 0x187   :  { %v123_v20 = vmul.f32 %v185_v19, %v105_v8  ;;  %133 = vst.msk [vmem:[#allocation7] sm:$0xf] %vm132_vm3, %v159_v18 }
 0x189   :  { %v160_v21 = vpack.c.bf16 %v123_v20, %v123_v20 }
 0x18b   :  { %134 = vst.msk [vmem:[#allocation7 + $0x4] sm:$0xf] %vm132_vm3, %v160_v21 }
 0x18c   :  { %237 = shalt.err (!%p234_p0)
}
 0x18d   :  { %146 = dma.vmem_to_hbm [thread:$0]  %s141_s1, 128, %s294_s2, [#allocation4], %s253_s12, %s253_s12, %s254_s13  }
 0x18e   :  { %250 = dma.done.wait [#allocation4], 128  }
 0x18f   :  { %251 = vsyncadd [#allocation4], 4294967168 }
 0x190   :  { %150 = vsyncpa [#allocation3], 1 }
 0x191   :  { %151 = vsyncpa [#allocation6], 1 }
 0x192   :  { %152 = vsyncpa [#allocation4], 1 }

</bundles_post_ra>
